<compile_context>
chip_gen: v7x
topology: tpu7x:2x2x1
jax: 0.10.0
libtpu: 0.0.40
codegen_flags: <defaults>
</compile_context>

<pallas_src>
import functools

import jax
import jax.numpy as jnp
from jax import lax
from jax.experimental import pallas as pl
from jax.experimental.pallas import tpu as pltpu


def _bilinear_weight_matrix(in_size: int, out_size: int) -> jnp.ndarray:
    """PyTorch F.interpolate(mode='bilinear', align_corners=False) weights.

    Returns W of shape (out_size, in_size) such that out_vec = W @ in_vec
    reproduces torch's upsample_bilinear2d along one axis.  Built with one-hot
    comparisons (no scatter).
    """
    scale = in_size / out_size
    dst = jnp.arange(out_size, dtype=jnp.float32)
    # area_pixel_compute_source_index (align_corners=False): clamp below at 0.
    src = jnp.maximum((dst + 0.5) * scale - 0.5, 0.0)
    i0 = jnp.minimum(jnp.floor(src).astype(jnp.int32), in_size - 1)
    i1 = jnp.minimum(i0 + 1, in_size - 1)
    lam1 = src - i0.astype(jnp.float32)
    lam0 = 1.0 - lam1
    cols = jnp.arange(in_size, dtype=jnp.int32)[None, :]            # (1, in)
    w = (lam0[:, None] * (cols == i0[:, None]).astype(jnp.float32)
         + lam1[:, None] * (cols == i1[:, None]).astype(jnp.float32))
    return w.astype(jnp.float32)                                     # (out, in)


def _vmem_sizes() -> tuple[int, int]:
    """Generation-aware (tile budget, scoped vmem limit) in bytes."""
    try:
        cap = int(pltpu.get_tpu_info().vmem_capacity_bytes)
    except Exception:
        cap = 64 * 1024 * 1024          # conservative (v7x-sized) fallback
    budget = min(64 << 20, max(16 << 20, (cap * 3) // 8))   # 128MiB->48, 64MiB->24
    limit = min(100 << 20, max(32 << 20, (cap * 3) // 4))   # 128MiB->96, 64MiB->48
    return budget, limit


def _choose_block_planes(nc: int, per_plane_bytes: int, budget_bytes: int) -> int:
    """Planes per grid step.

    Prefers the largest budget-feasible block whose grid (cdiv) is even and
    >= 4 steps (>= 2 pipelined steps per TensorCore on v7x, balanced sharding),
    without requiring the block size to divide nc (ragged last block is OK).
    """
    cap = max(1, min(nc, budget_bytes // max(per_plane_bytes, 1)))
    if nc <= 4:
        return 1
    best_any = None
    best_even = None
    for b in range(cap, 0, -1):
        steps = -(-nc // b)              # cdiv
        if steps < 4:
            continue
        if best_any is None:
            best_any = b                 # largest bsz giving >= 4 steps
        if steps % 2 == 0:
            best_even = b                # largest bsz giving an even grid
            break
    if best_any is None:
        return cap
    # Accept the even-grid choice unless it costs more than 2x in block size.
    if best_even is not None and best_even * 2 >= best_any:
        return best_even
    return best_any


def _resize_kernel(wh_ref, wwt_ref, x_ref, o_ref, tmp_ref, *, fuse_cols, precision):
    # wh_ref : (dim, H_in)      — row-interp matrix (constant block, resident)
    # wwt_ref: (W_in, dim)      — col-interp matrix, pre-transposed (resident)
    # x_ref  : (B, H_in, W_in)  — B image planes
    # o_ref  : (B, dim, dim)
    # tmp_ref: (B, H_in, dim)   — fp32 VMEM scratch for the column-interp result
    b, h_in, w_in = x_ref.shape
    wh = wh_ref[...]
    wwt = wwt_ref[...]

    if fuse_cols:
        # One lane-dense MXU matmul for the column interpolation of all planes
        # (free relayout: H_in % 8 == 0 so the (B, H) merge is sublane-aligned).
        x2d = x_ref[...].reshape(b * h_in, w_in)
        tmp_ref[...] = jnp.dot(
            x2d, wwt, preferred_element_type=jnp.float32, precision=precision
        ).reshape(b, h_in, tmp_ref.shape[-1])

        def row_body(i, carry):
            o_ref[i] = jnp.dot(
                wh, tmp_ref[i], preferred_element_type=jnp.float32,
                precision=precision).astype(o_ref.dtype)
            return carry

        lax.fori_loop(0, b, row_body, 0, unroll=(b <= 8))
    else:
        # H_in not sublane-aligned: avoid the (B*H, W) reshape (would force a
        # relayout copy every step); per-plane 2-D dots through the scratch.
        def plane_body(i, carry):
            tmp_ref[i] = jnp.dot(x_ref[i], wwt,
                                 preferred_element_type=jnp.float32,
                                 precision=precision)
            o_ref[i] = jnp.dot(wh, tmp_ref[i],
                               preferred_element_type=jnp.float32,
                               precision=precision).astype(o_ref.dtype)
            return carry

        lax.fori_loop(0, b, plane_body, 0, unroll=(b <= 8))


@functools.partial(jax.jit, static_argnames=("dim", "out_dtype"))
def resize_image_forward(x: jnp.ndarray, dim: int = 224,
                         out_dtype=None) -> jnp.ndarray:
    """Pallas equivalent of ResizeImage.forward's interpolate step.

    x: (N, C, H, W) float32 -> (N, C, dim, dim) in `out_dtype`
    (default: x.dtype; pass jnp.bfloat16 to halve the output HBM writeback
    when the downstream backbone accepts bf16 activations).
    """
    n, c, h_in, w_in = x.shape
    nc = n * c
    out_dtype = jnp.dtype(x.dtype if out_dtype is None else out_dtype)
    # fp32-exact parity uses multi-pass MXU; bf16 fast path uses one bf16 pass.
    precision = (lax.Precision.HIGHEST if out_dtype == jnp.dtype(jnp.float32)
                 else lax.Precision.DEFAULT)

    wh = _bilinear_weight_matrix(h_in, dim)          # (dim, H_in)
    wwt = _bilinear_weight_matrix(w_in, dim).T       # (W_in, dim)

    x_flat = x.reshape(nc, h_in, w_in)
    in_bytes = jnp.dtype(x.dtype).itemsize
    out_bytes = out_dtype.itemsize

    budget, vmem_limit = _vmem_sizes()
    # Charge the (double-buffered) resident weight tiles against the budget.
    weight_bytes = 2 * 4 * (dim * h_in + w_in * dim)
    per_plane = (2 * in_bytes * h_in * w_in          # double-buffered input tile
                 + 4 * h_in * dim                    # fp32 scratch (single buf)
                 + 2 * out_bytes * dim * dim)        # double-buffered output tile
    bsz = _choose_block_planes(nc, per_plane, max(budget - weight_bytes, per_plane))
    grid = (pl.cdiv(nc, bsz),)

    fuse_cols = (h_in % 8 == 0)
    kernel = functools.partial(_resize_kernel, fuse_cols=fuse_cols,
                               precision=precision)

    cost = pl.CostEstimate(
        flops=2 * nc * (h_in * w_in * dim + h_in * dim * dim),
        transcendentals=0,
        bytes_accessed=(in_bytes * nc * h_in * w_in
                        + out_bytes * nc * dim * dim
                        + 4 * (dim * h_in + w_in * dim)),
    )

    out_flat = pl.pallas_call(
        kernel,
        out_shape=jax.ShapeDtypeStruct((nc, dim, dim), out_dtype),
        grid_spec=pltpu.PrefetchScalarGridSpec(
            num_scalar_prefetch=0,
            grid=grid,
            in_specs=[
                pl.BlockSpec((dim, h_in), lambda i: (0, 0)),      # Wh (resident)
                pl.BlockSpec((w_in, dim), lambda i: (0, 0)),      # Ww^T (resident)
                pl.BlockSpec((bsz, h_in, w_in), lambda i: (i, 0, 0)),
            ],
            out_specs=pl.BlockSpec((bsz, dim, dim), lambda i: (i, 0, 0)),
            scratch_shapes=[pltpu.VMEM((bsz, h_in, dim), jnp.float32)],
        ),
        compiler_params=pltpu.CompilerParams(
            dimension_semantics=("parallel",),
            vmem_limit_bytes=vmem_limit,
        ),
        cost_estimate=cost,
    )(wh, wwt, x_flat)

    resized = out_flat.reshape(n, c, dim, dim)
    # TODO(synk): return self.model(resized) once a concrete backbone is given.
    return resized


def _reference_resize(x: jnp.ndarray, dim: int) -> jnp.ndarray:
    """Plain-JAX fp32 reference using the same separable-weight formulation."""
    _, _, h, w = x.shape
    wh = _bilinear_weight_matrix(h, dim)             # (dim, H)
    ww = _bilinear_weight_matrix(w, dim)             # (dim, W)
    t = jnp.einsum('nchw,pw->nchp', x, ww, precision=lax.Precision.HIGHEST)
    return jnp.einsum('oh,nchp->ncop', wh, t, precision=lax.Precision.HIGHEST)


if __name__ == "__main__":
    key = jax.random.PRNGKey(0)

    # Case 1: fused lane-dense path (H % 8 == 0), even grid of 4, fp32 output.
    N, C, H, W = 2, 4, 16, 16
    DIM = 32  # module default is 224; small dim for the example
    x = jax.random.normal(key, (N, C, H, W), dtype=jnp.float32)
    out = jax.block_until_ready(resize_image_forward(x, dim=DIM))
    assert out.shape == (N, C, DIM, DIM), out.shape
    assert out.dtype == jnp.float32, out.dtype
    ref = _reference_resize(x, DIM)
    assert bool(jnp.allclose(out, ref, atol=1e-4, rtol=1e-4)), (
        float(jnp.max(jnp.abs(out - ref))))

    # Case 2: bf16 writeback fast path (halves output HBM traffic).
    out_bf16 = jax.block_until_ready(
        resize_image_forward(x, dim=DIM, out_dtype=jnp.bfloat16))
    assert out_bf16.dtype == jnp.bfloat16, out_bf16.dtype
    assert bool(jnp.allclose(out_bf16.astype(jnp.float32), ref,
                             atol=1e-1, rtol=5e-2))

    # Case 3: nc=9 does not divide the chosen block -> ragged (masked) last block.
    x3 = jax.random.normal(jax.random.PRNGKey(1), (3, 3, 16, 16), dtype=jnp.float32)
    out3 = jax.block_until_ready(resize_image_forward(x3, dim=DIM))
    ref3 = _reference_resize(x3, DIM)
    assert bool(jnp.allclose(out3, ref3, atol=1e-4, rtol=1e-4)), (
        float(jnp.max(jnp.abs(out3 - ref3))))

    # Case 4: H not a multiple of 8 -> per-plane (no-reshape) path, up/down mix.
    x4 = jax.random.normal(jax.random.PRNGKey(2), (1, 3, 12, 20), dtype=jnp.float32)
    out4 = jax.block_until_ready(resize_image_forward(x4, dim=16))
    ref4 = _reference_resize(x4, 16)
    assert bool(jnp.allclose(out4, ref4, atol=1e-4, rtol=1e-4)), (
        float(jnp.max(jnp.abs(out4 - ref4))))

    print("KERNEL_OK")
</pallas_src>

<mosaic_0001>
module attributes {stable_mosaic.version = 11 : i64} {
  func.func @_resize_kernel(%arg0: i32, %arg1: memref<32x16xf32, #tpu.memory_space<vmem>>, %arg2: memref<16x32xf32, #tpu.memory_space<vmem>>, %arg3: memref<2x16x16xf32, #tpu.memory_space<vmem>>, %arg4: memref<2x32x32xf32, #tpu.memory_space<vmem>>, %arg5: memref<2x16x32xf32, #tpu.memory_space<vmem>>) attributes {dimension_semantics = [#tpu.dimension_semantics<parallel>], iteration_bounds = array<i64: 4>, scalar_prefetch = 0 : i64, scratch_operands = 1 : i64, tpu.core_type = #tpu.core_type<tc>, window_params = [{pipeline_mode = #tpu.pipeline_mode<synchronous>, transform_indices = @transform_0, window_bounds = array<i64: 32, 16>}, {pipeline_mode = #tpu.pipeline_mode<synchronous>, transform_indices = @transform_1, window_bounds = array<i64: 16, 32>}, {transform_indices = @transform_2, window_bounds = array<i64: 2, 16, 16>}, {transform_indices = @transform_3, window_bounds = array<i64: 2, 32, 32>}]} {
    %c0 = arith.constant 0 : index
    %c0_0 = arith.constant 0 : index
    %0 = vector.load %arg1[%c0, %c0_0] : memref<32x16xf32, #tpu.memory_space<vmem>>, vector<32x16xf32>
    %c0_1 = arith.constant 0 : index
    %c0_2 = arith.constant 0 : index
    %1 = vector.load %arg2[%c0_1, %c0_2] : memref<16x32xf32, #tpu.memory_space<vmem>>, vector<16x32xf32>
    %c0_3 = arith.constant 0 : index
    %c0_4 = arith.constant 0 : index
    %c0_5 = arith.constant 0 : index
    %2 = vector.load %arg3[%c0_3, %c0_4, %c0_5] : memref<2x16x16xf32, #tpu.memory_space<vmem>>, vector<2x16x16xf32>
    %3 = vector.shape_cast %2 : vector<2x16x16xf32> to vector<32x16xf32>
    %cst = arith.constant dense<0.000000e+00> : vector<32x32xf32>
    %4 = tpu.matmul %3, %1, %cst {dimension_numbers = #tpu.dot_dimension_numbers<[1], [0], [0], [1], [0, 0, 1, 1], [], []>, precision = #tpu.contract_precision<fp32>} : vector<32x16xf32>, vector<16x32xf32>, vector<32x32xf32> -> vector<32x32xf32>
    %5 = vector.shape_cast %4 : vector<32x32xf32> to vector<2x16x32xf32>
    %c0_6 = arith.constant 0 : index
    %c0_7 = arith.constant 0 : index
    %c0_8 = arith.constant 0 : index
    %6 = vector.load %arg5[%c0_6, %c0_7, %c0_8] : memref<2x16x32xf32, #tpu.memory_space<vmem>>, vector<2x16x32xf32>
    tpu.vector_store %arg5[%c0_6, %c0_7, %c0_8], %5 {strides = array<i32>} : memref<2x16x32xf32, #tpu.memory_space<vmem>>, vector<2x16x32xf32>,
    %c0_i32 = arith.constant 0 : i32
    %7 = arith.index_cast %c0_i32 : i32 to index
    %c0_9 = arith.constant 0 : index
    %c0_10 = arith.constant 0 : index
    %8 = vector.load %arg5[%7, %c0_9, %c0_10] : memref<2x16x32xf32, #tpu.memory_space<vmem>>, vector<1x16x32xf32>
    %9 = vector.shape_cast %8 : vector<1x16x32xf32> to vector<16x32xf32>
    %cst_11 = arith.constant dense<0.000000e+00> : vector<32x32xf32>
    %10 = tpu.matmul %0, %9, %cst_11 {dimension_numbers = #tpu.dot_dimension_numbers<[1], [0], [0], [1], [0, 0, 1, 1], [], []>, precision = #tpu.contract_precision<fp32>} : vector<32x16xf32>, vector<16x32xf32>, vector<32x32xf32> -> vector<32x32xf32>
    %11 = arith.index_cast %c0_i32 : i32 to index
    %c0_12 = arith.constant 0 : index
    %c0_13 = arith.constant 0 : index
    %12 = vector.load %arg4[%11, %c0_12, %c0_13] : memref<2x32x32xf32, #tpu.memory_space<vmem>>, vector<1x32x32xf32>
    %13 = vector.shape_cast %12 : vector<1x32x32xf32> to vector<32x32xf32>
    %14 = vector.shape_cast %10 : vector<32x32xf32> to vector<1x32x32xf32>
    tpu.vector_store %arg4[%11, %c0_12, %c0_13], %14 {strides = array<i32>} : memref<2x32x32xf32, #tpu.memory_space<vmem>>, vector<1x32x32xf32>,
    %c1_i32 = arith.constant 1 : i32
    %15 = arith.index_cast %c1_i32 : i32 to index
    %c0_14 = arith.constant 0 : index
    %c0_15 = arith.constant 0 : index
    %16 = vector.load %arg5[%15, %c0_14, %c0_15] : memref<2x16x32xf32, #tpu.memory_space<vmem>>, vector<1x16x32xf32>
    %17 = vector.shape_cast %16 : vector<1x16x32xf32> to vector<16x32xf32>
    %cst_16 = arith.constant dense<0.000000e+00> : vector<32x32xf32>
    %18 = tpu.matmul %0, %17, %cst_16 {dimension_numbers = #tpu.dot_dimension_numbers<[1], [0], [0], [1], [0, 0, 1, 1], [], []>, precision = #tpu.contract_precision<fp32>} : vector<32x16xf32>, vector<16x32xf32>, vector<32x32xf32> -> vector<32x32xf32>
    %19 = arith.index_cast %c1_i32 : i32 to index
    %c0_17 = arith.constant 0 : index
    %c0_18 = arith.constant 0 : index
    %20 = vector.load %arg4[%19, %c0_17, %c0_18] : memref<2x32x32xf32, #tpu.memory_space<vmem>>, vector<1x32x32xf32>
    %21 = vector.shape_cast %20 : vector<1x32x32xf32> to vector<32x32xf32>
    %22 = vector.shape_cast %18 : vector<32x32xf32> to vector<1x32x32xf32>
    tpu.vector_store %arg4[%19, %c0_17, %c0_18], %22 {strides = array<i32>} : memref<2x32x32xf32, #tpu.memory_space<vmem>>, vector<1x32x32xf32>,
    %c2_i32 = arith.constant 2 : i32
    return
  }
  func.func @transform_0(%arg0: i32) -> (i32, i32) {
    %c0_i32 = arith.constant 0 : i32
    %c0_i32_0 = arith.constant 0 : i32
    %c0_i32_1 = arith.constant 0 : i32
    return %c0_i32, %c0_i32_0 : i32, i32
  }
  func.func @transform_1(%arg0: i32) -> (i32, i32) {
    %c0_i32 = arith.constant 0 : i32
    %c0_i32_0 = arith.constant 0 : i32
    %c0_i32_1 = arith.constant 0 : i32
    return %c0_i32, %c0_i32_0 : i32, i32
  }
  func.func @transform_2(%arg0: i32) -> (i32, i32, i32) {
    %c0_i32 = arith.constant 0 : i32
    %c0_i32_0 = arith.constant 0 : i32
    %c0_i32_1 = arith.constant 0 : i32
    return %arg0, %c0_i32, %c0_i32_0 : i32, i32, i32
  }
  func.func @transform_3(%arg0: i32) -> (i32, i32, i32) {
    %c0_i32 = arith.constant 0 : i32
    %c0_i32_0 = arith.constant 0 : i32
    %c0_i32_1 = arith.constant 0 : i32
    return %arg0, %c0_i32, %c0_i32_0 : i32, i32, i32
  }
}

</mosaic_0001>

<bundles_post_ra>
// kernel: resize_image_forward.1
= control target key start
LH: loop header
LB: loop body
LE: loop exit
PB: predicated region body
PF: predicated region fallthrough
CT: control target
= control target key end

     0   :  { %8 = vsyncpa [#allocation4], 0  ;;  %s3011_s0 = inlined_call_operand.vmem [shape: f32[32,16], index: 0, kind: input, shape index: {}]   ;;  %s3012_s1 = inlined_call_operand.vmem [shape: f32[16,32], index: 1, kind: input, shape index: {}]   ;;  %s3013_s2 = inlined_call_operand.hbm [shape: f32[8,16,16], index: 2, kind: input, shape index: {}]   ;;  %s3014_s3 = inlined_call_operand.hbm [shape: f32[8,32,32], index: 3, kind: output, shape index: {}]  }
   0x1   :  { %10 = vsyncpa [#allocation4 + $0x1], 0 }
   0x2   :  { %11 = vsyncpa [#allocation5], 0 }
   0x3   :  { %13 = vsyncpa [#allocation5 + $0x1], 0  ;;  %s2716_s12 = smov 0   ;;  %s2718_s13 = smov 0  }
   0x4   :  { %s2720_s14 = smov 0   ;;  %s2722_s15 = smov 0  }
   0x5 LB: > { %s2737_s16 = sadd.s32 4294967295, %s2688_s15   ;;  %s2098_s17 = sadd.s32 4294967294, %s2688_s15   ;;  %s2688_s15 = sphi %s2722_s15, %s3026_s15   ;;  %s2684_s14 = sphi %s2720_s14, %s3025_s14   ;;  %s2680_s13 = sphi %s2718_s13, %s3024_s13   ;;  %s2676_s12 = sphi %s2716_s12, %s3023_s12  }
   0x6   : > { %s2741_s18 = sadd.s32 1, %s2688_s15   ;;  %s68_s19 = sadd.s32 1, %s2684_s14 }
   0x7   : > { %s65_s20 = ssub.s32 %s2688_s15, %s2741_s18  ;;  %p75_p0 = scmp.ne.s32.totalorder %s2684_s14, %s2680_s13 }
   0x8   : > { %p66_p1 = scmp.eq.s32.totalorder %s65_s20, 0  ;;  %p76_p2 = scmp.eq.s32.totalorder %s2688_s15, 0 }
   0x9   : > { %p81_p3 = scmp.ne.s32.totalorder %s2680_s13, %s2676_s12  ;;  %p82_p4 = scmp.eq.s32.totalorder %s2737_s16, 0 }
   0xa   : > { %s2753_s21 = scalar_select %p66_p1, %s2684_s14, %s68_s19  }
   0xb   : > { %p2755_p5 = por %p76_p2, %p75_p0  ;;  %p2759_p6 = por %p82_p4, %p81_p3 }
   0xc   : > { %p105_p7 = scmp.eq.s32.totalorder %s2737_s16, 3  ;;  %p111_p8 = scmp.eq.s32.totalorder %s2098_s17, 3 }
   0xd   : > { %p2554_p9 = scmp.lt.s32.totalorder %s2688_s15, 4  ;;  %s137_s26 = sand.u32 1, %s2684_s14  }
   0xe   : > { %p2765_p10 = por %p105_p7, %p75_p0  ;;  %p2769_p11 = por %p111_p8, %p81_p3 }
   0xf   : > { %s2119_s27 = sshll.u32 %s2688_s15, 9  ;;  %s2101_s28 = sshll.u32 %s137_s26, 5 }
  0x10   : > { %s3018_s24 = scalar_select %p2765_p10, 1, 0 }
  0x11   : > { %s3019_s25 = scalar_select %p2769_p11, 1, 0 }
  0x12   : > { %s2778_s4 = scalar_lea.hbm %s3013_s2, %s2119_s27  ;;  %s141_s5 = scalar_lea.vmem [#allocation3], %s2101_s28 }
  0x13   : > { %s149_s6 = sshll.u32 %s141_s5, 4  ;;  %p2782_p12 = pnand %p2554_p9, %p2755_p5  ;;  %s2786_s6 = int_to_ptr.vmem [resolvable:$true] %s149_s6 }
  0x14   : > { %s2788_s8 = scalar_lea.sflag [#allocation4], %s137_s26  ;;  %s2592_s9 = scalar_lea.hbm %s2778_s4, 512 }
  0x15   : > { %p2593_p13 = scmp.ne.s32.totalorder %s2778_s4, %s2592_s9  ;;  %p2594_p0 = pneg %p2782_p12 }
  0x16   : > { %s2597_s17 = scalar_lea.hbm %s3013_s2, 2048  ;;  %p2598_p3 = scmp.lt.u32.totalorder %s2778_s4, %s3013_s2 }
  0x17   : > { %p2595_p1 = pnand %p2594_p0, %p2593_p13  ;;  %p2599_p4 = scmp.lt.u32.totalorder %s2597_s17, %s2592_s9 }
  0x18   : > { %p2601_p7 = scmp.lt.u32.totalorder %s2592_s9, %s2778_s4 }
  0x19   : > { %p2596_p2 = pneg %p2595_p1  ;;  %p2600_p5 = por %p2599_p4, %p2598_p3 }
  0x1b   : > { %p2602_p8 = por %p2601_p7, %p2600_p5 }
  0x1d   : > { %p2603_p9 = pnand %p2602_p8, %p2596_p2 }
  0x1f   : > { %2606 = shalt.err (!%p2603_p9)
}
  0x20   : > { %s2607_s22 = scalar_lea.vmem %s2786_s6, 512  ;;  %s2690_s26 = smov [#allocation3]  }
  0x21   : > { %p2608_p13 = scmp.ne.s32.totalorder %s2786_s6, %s2607_s22  ;;  %s2612_s27 = sshll.u32 %s2690_s26, 4  ;;  %s2613_s27 = int_to_ptr.vmem [resolvable:$false] %s2612_s27 }
  0x22   : > { %s2614_s28 = scalar_lea.vmem %s2613_s27, 1024  ;;  %p2615_p10 = scmp.lt.s32.totalorder %s2786_s6, %s2613_s27 }
  0x23   : > { %p2610_p1 = pnand %p2608_p13, %p2594_p0  ;;  %p2616_p3 = scmp.lt.s32.totalorder %s2614_s28, %s2607_s22 }
  0x25   : > { %p2611_p11 = pneg %p2610_p1  ;;  %p2617_p4 = por %p2616_p3, %p2615_p10 }
  0x27   : > { %p2618_p5 = pnand %p2617_p4, %p2611_p11 }
  0x29   : > { %2621 = shalt.err (!%p2618_p5)
}
  0x2a   : > { %s2691_s29 = smov 128   ;;  %s2692_s30 = smov 8  }
  0x2b   : > { %2549 = dma.hbm_to_vmem [thread:$0]  (!%p2782_p12), %s2778_s4, 512, %s2786_s6, %s2788_s8, %s2691_s29, %s2691_s29, %s2692_s30  }
  0x2c   : > { %p2105_p0 = scmp.ge.s32.totalorder %s2688_s15, 1  ;;  %p157_p2 = scmp.lt.s32.totalorder %s2688_s15, 5 }
  0x2e   : > { %p158_p7 = pnand %p2105_p0, %p157_p2 }
  0x2f   : > { %s2819_s5 = sand.u32 (!%p158_p7), 1, %s2680_s13  }
  0x30   : > { %161 = sbr.rel (%p158_p7) target bundleno = 594 (0x252), region = 32  ;;  %s2106_s9 = sshll.u32 (!%p158_p7), %s2819_s5, 5 }
  0x31   : > { %s164_s10 = scalar_lea.sflag (!%p158_p7), [#allocation4], %s2819_s5  ;;  %s167_s11 = scalar_lea.vmem (!%p158_p7), [#allocation3], %s2106_s9 }
  0x37   : > { %2667 = dma.done.wait (%p2759_p6), %s164_s10, 512  }
  0x38   : > { %2669 = vsyncadd (%p2759_p6), %s164_s10, 4294966784  ;;  %vm202_vm0 = vcmask 130048   ;;  %v196_v0 = vld [vmem:[%s3012_s1] sm:$0xff]  ;;  %v197_v1 = vld [vmem:[%s3012_s1 + $0x8] sm:$0xff]  ;;  %vm803_vm1 = vcmask 261120   ;;  %s2107_s29 = sshll.u32 %s2819_s5, 6 }
  0x39   : > { %v198_v2 = vld [vmem:[%s167_s11] sm:$0xff]  ;;  %v216_v3 = vand.u32 4294901760, %v196_v0  ;;  %v219_v4 = vand.u32 4294901760, %v197_v1  ;;  %v199_v6 = vld [vmem:[%s167_s11 + $0x8] sm:$0xff]  ;;  %v200_v7 = vld [vmem:[%s167_s11 + $0x10] sm:$0xff]  ;;  %s189_s30 = scalar_lea.vmem [#allocation6], %s2107_s29 }
  0x3a   : > { %v204_v5 = vsel %vm202_vm0, %v198_v2, 0  ;;  %v201_v8 = vld [vmem:[%s167_s11 + $0x18] sm:$0xff]  ;;  %v207_v10 = vsel %vm202_vm0, %v199_v6, 0  ;;  %v210_v11 = vsel %vm202_vm0, %v200_v7, 0  ;;  %v192_v44 = vld [vmem:[%s3011_s0] sm:$0xff]  ;;  %v193_v51 = vld [vmem:[%s3011_s0 + $0x8] sm:$0xff] }
  0x3b   : > { %v282_v9 = vand.u32 4294901760, %v204_v5  ;;  %v213_v12 = vsel %vm202_vm0, %v201_v8, 0  ;;  %v2410_v13 = vpack.c.bf16 %v219_v4, %v216_v3  ;;  %v292_v14 = vand.u32 4294901760, %v207_v10  ;;  %v194_v52 = vld [vmem:[%s3011_s0 + $0x10] sm:$0xff]  ;;  %v195_v57 = vld [vmem:[%s3011_s0 + $0x18] sm:$0xff]  ;;  %s2025_s9 = sshll.u32 %s189_s30, 4  ;;  %s2960_s9 = int_to_ptr.vmem [resolvable:$true] %s2025_s9 }
  0x3c   : > { %v302_v15 = vand.u32 4294901760, %v210_v11  ;;  %v312_v16 = vand.u32 4294901760, %v213_v12  ;;  %v324_v18 = vsub.f32 %v196_v0, %v216_v3  ;;  %v331_v19 = vsub.f32 %v197_v1, %v219_v4  ;;  %s2121_s10 = sshll.u32 %s2737_s16, 10  ;;  %s2011_s16 = scalar_lea.sflag [#allocation5], %s2819_s5 }
  0x3d   : > { %v283_v17 = vsub.f32 %v204_v5, %v282_v9  ;;  %2423 = vmatprep.subr.bf16.mxu0 %v2410_v13  ;;  %2411 = vmatprep.subr.bf16.mxu1 %v2410_v13  ;;  %v293_v20 = vsub.f32 %v207_v10, %v292_v14  ;;  %v811_v45 = vsel %vm202_vm0, %v192_v44, 0  ;;  %v814_v55 = vsel %vm202_vm0, %v193_v51, 0  ;;  %s2966_s6 = scalar_lea.hbm %s3014_s3, %s2121_s10  ;;  %s2622_s7 = scalar_lea.vmem %s2960_s9, 1024 }
  0x3e   : > { %v303_v21 = vsub.f32 %v210_v11, %v302_v15  ;;  %v313_v22 = vsub.f32 %v213_v12, %v312_v16  ;;  %2425 = vmatpush3.bf16.msra.mxu0 %v2410_v13  ;;  %2413 = vmatpush3.bf16.msra.mxu1 %v2410_v13  ;;  %v325_v24 = vand.u32 4294901760, %v324_v18  ;;  %v332_v25 = vand.u32 4294901760, %v331_v19  ;;  %p2623_p6 = scmp.ne.s32.totalorder %s2960_s9, %s2622_s7  ;;  %p3021_p10 = scmp.ne.s32.totalorder %s3018_s24, 0 }
  0x3f   : > { %v284_v23 = vand.u32 4294901760, %v283_v17  ;;  %v294_v26 = vand.u32 4294901760, %v293_v20  ;;  %v2418_v43 = vpack.c.bf16 %v331_v19, %v324_v18  ;;  %v2841_v46 = vand.u32 4294901760, %v811_v45  ;;  %s2693_s8 = smov [#allocation6]  }
  0x40   : > { %v304_v27 = vand.u32 4294901760, %v303_v21  ;;  %v314_v28 = vand.u32 4294901760, %v313_v22  ;;  %v2426_v30 = vpack.c.bf16 %v332_v25, %v325_v24  ;;  %v326_v31 = vsub.f32 %v324_v18, %v325_v24  ;;  %p2624_p11 = pnand %p2623_p6, %p3021_p10  ;;  %s2626_s23 = sshll.u32 %s2693_s8, 4  ;;  %s2627_s23 = int_to_ptr.vmem [resolvable:$false] %s2626_s23 }
  0x41   : > { %2264 = vmatprep.mubr.f32.mxu0 %v284_v23  ;;  %v285_v29 = vsub.f32 %v283_v17, %v284_v23  ;;  %v333_v32 = vsub.f32 %v331_v19, %v332_v25  ;;  %v295_v33 = vsub.f32 %v293_v20, %v294_v26  ;;  %v2844_v47 = vsub.f32 %v811_v45, %v2841_v46  ;;  %s2628_s17 = scalar_lea.vmem %s2627_s23, 2048  ;;  %p2629_p8 = scmp.lt.s32.totalorder %s2960_s9, %s2627_s23 }
  0x42   : > { %2265 = vmatmul.mubr.f32.vlgmr.msra.gmra.mrb[0].mxu0 %v294_v26  ;;  %v305_v34 = vsub.f32 %v303_v21, %v304_v27  ;;  %v315_v35 = vsub.f32 %v313_v22, %v314_v28  ;;  %2427 = vmatprep.subr.bf16.mxu0 %v2426_v30  ;;  %v327_v37 = vand.u32 4294901760, %v326_v31  ;;  %v817_v56 = vsel %vm202_vm0, %v194_v52, 0  ;;  %p2625_p12 = pneg %p2624_p11  ;;  %p2630_p9 = scmp.lt.s32.totalorder %s2628_s17, %s2622_s7 }
  0x43   : > { %v286_v36 = vand.u32 4294901760, %v285_v29  ;;  %2267 = vmatprep.mubr.f32.mxu0 %v304_v27  ;;  %v334_v38 = vand.u32 4294901760, %v333_v32  ;;  %v296_v39 = vand.u32 4294901760, %v295_v33  ;;  %2429 = vmatpush3.bf16.msra.mxu0 %v2426_v30  ;;  %v2847_v48 = vand.u32 4294901760, %v2844_v47 }
  0x44   : > { %v306_v40 = vand.u32 4294901760, %v305_v34  ;;  %2431 = vmatprep.subr.bf16.mxu0 %v2410_v13  ;;  %v316_v42 = vand.u32 4294901760, %v315_v35  ;;  %v2862_v60 = vand.u32 4294901760, %v814_v55  ;;  %v2864_v0 = vand.u32 4294901760, %v817_v56  ;;  %p2631_p13 = por %p2630_p9, %p2629_p8 }
  0x45   : > { %2234 = vmatprep.mubr.f32.mxu1 %v286_v36  ;;  %v2414_v41 = vpack.c.bf16 %v334_v38, %v327_v37  ;;  %v892_v49 = vsub.f32 %v2844_v47, %v2847_v48  ;;  %v820_v1 = vsel %vm202_vm0, %v195_v57, 0 }
  0x46   : > { %2235 = vmatmul.mubr.f32.vlgmr.msra.gmra.mrb[0].mxu1 %v296_v39  ;;  %2268 = vmatmul.mubr.f32.gmra.mrb[2].mxu0 %v314_v28  ;;  %v2870_v4 = vsub.f32 %v814_v55, %v2862_v60  ;;  %v2872_v5 = vand.u32 4294901760, %v820_v1  ;;  %v2875_v8 = vsub.f32 %v817_v56, %v2864_v0  ;;  %p2632_p1 = pnand %p2631_p13, %p2625_p12 }
  0x47   : > { %2237 = vmatprep.mubr.f32.mxu1 %v306_v40  ;;  %2274 = vmatprep.mubr.f32.mxu0 %v282_v9  ;;  %v893_v50 = vand.u32 4294901760, %v892_v49 }
  0x48   : > { %2415 = vmatprep.subr.bf16.mxu1 %v2414_v41  ;;  %v2880_v10 = vand.u32 4294901760, %v2870_v4  ;;  %v2883_v11 = vsub.f32 %v820_v1, %v2872_v5  ;;  %v2886_v12 = vand.u32 4294901760, %v2875_v8 }
  0x49   : > { %2417 = vmatpush3.bf16.msra.mxu1 %v2414_v41 }
  0x4a   : > { %2238 = vmatmul.mubr.f32.gmra.mrb[2].mxu1 %v316_v42  ;;  %2275 = vmatmul.mubr.f32.vlgmr.msra.gmra.mrb[0].mxu0 %v292_v14  ;;  %v2891_v18 = vand.u32 4294901760, %v2883_v11  ;;  %v912_v19 = vsub.f32 %v2875_v8, %v2886_v12 }
  0x4b   : > { %2244 = vmatprep.mubr.f32.mxu1 %v282_v9  ;;  %2277 = vmatprep.mubr.f32.mxu0 %v302_v15 }
  0x4c   : > { %2433 = vmatpush3.bf16.msra.mxu0 %v2410_v13  ;;  %2419 = vmatprep.subr.bf16.mxu1 %v2418_v43  ;;  %v922_v29 = vsub.f32 %v2883_v11, %v2891_v18  ;;  %v913_v31 = vand.u32 4294901760, %v912_v19 }
  0x4e   : > { %2245 = vmatmul.mubr.f32.vlgmr.msra.gmra.mrb[0].mxu1 %v292_v14  ;;  %2278 = vmatmul.mubr.f32.gmra.mrb[2].mxu0 %v312_v16  ;;  %v923_v39 = vand.u32 4294901760, %v922_v29 }
  0x4f   : > { %2247 = vmatprep.mubr.f32.mxu1 %v302_v15  ;;  %2284 = vmatprep.mubr.f32.mxu0 %v282_v9 }
  0x50   : > { %2421 = vmatpush3.bf16.msra.mxu1 %v2418_v43 }
  0x52   : > { %2248 = vmatmul.mubr.f32.gmra.mrb[2].mxu1 %v312_v16  ;;  %2285 = vmatmul.mubr.f32.vlgmr.msra.gmra.mrb[0].mxu0 %v292_v14 }
  0x53   : > { %2254 = vmatprep.mubr.f32.mxu1 %v283_v17  ;;  %2287 = vmatprep.mubr.f32.mxu0 %v302_v15  ;;  %v902_v17 = vsub.f32 %v2870_v4, %v2880_v10 }
  0x55   : > { %v903_v27 = vand.u32 4294901760, %v902_v17 }
  0x56   : > { %2255 = vmatmul.mubr.f32.vlgmr.msra.gmra.mrb[0].mxu1 %v293_v20  ;;  %2288 = vmatmul.mubr.f32.gmra.mrb[2].mxu0 %v312_v16 }
  0x57   : > { %2257 = vmatprep.mubr.f32.mxu1 %v303_v21  ;;  %2354 = vmatprep.mubr.f32.mxu0 %v893_v50 }
  0x5a   : > { %2258 = vmatmul.mubr.f32.gmra.mrb[2].mxu1 %v313_v22 }
  0x5b   : > { %2294 = vmatprep.mubr.f32.mxu1 %v893_v50 }
 0x125   : > { %v2286_v53 = vpop.f32.mrb[0].mxu0 }
 0x126   : > { %v781_v54 = vpop.f32.mrb[1].mxu0 }
 0x129   : > { %v2256_v58 = vpop.f32.mrb[0].mxu1  ;;  %v2289_v59 = vpop.f32.mrb[2].mxu0 }
 0x12a   : > { %v2482_v61 = vadd.f32 %v2286_v53, %v2256_v58  ;;  %v493_v62 = vpop.f32.mrb[1].mxu1  ;;  %v793_v63 = vpop.f32.mrb[3].mxu0 }
 0x12b   : > { %v2483_v2 = vadd.f32 %v781_v54, %v493_v62 }
 0x12c   : > { %805 = vst.msk [vmem:[#allocation2 + $0x8] sm:$0xff] %vm803_vm1, %v2482_v61 }
 0x12d   : > { %804 = vst.msk [vmem:[#allocation2] sm:$0xff] %vm803_vm1, %v2483_v2  ;;  %v2259_v3 = vpop.f32.mrb[2].mxu1 }
 0x12e   : > { %v2484_v6 = vadd.f32 %v2289_v59, %v2259_v3  ;;  %v507_v7 = vpop.f32.mrb[3].mxu1 }
 0x12f   : > { %v2485_v9 = vadd.f32 %v793_v63, %v507_v7 }
 0x130   : > { %807 = vst.msk [vmem:[#allocation2 + $0x18] sm:$0xff] %vm803_vm1, %v2484_v6 }
 0x131   : > { %806 = vst.msk [vmem:[#allocation2 + $0x10] sm:$0xff] %vm803_vm1, %v2485_v9 }
 0x133   : > { %v809_v13 = vld [vmem:[#allocation2 + $0x8] sm:$0xff] }
 0x134   : > { %v808_v14 = vld [vmem:[#allocation2] sm:$0xff]  ;;  %v826_v15 = vand.u32 4294901760, %v809_v13 }
 0x135   : > { %v823_v16 = vand.u32 4294901760, %v808_v14 }
 0x136   : > { %v938_v20 = vsub.f32 %v809_v13, %v826_v15 }
 0x137   : > { %v2895_v21 = vpack.c.bf16 %v826_v15, %v823_v16  ;;  %v1416_v22 = vld [vmem:[#allocation2 + $0x18] sm:$0xff]  ;;  %v931_v23 = vsub.f32 %v808_v14, %v823_v16 }
 0x138   : > { %v1415_v24 = vld [vmem:[#allocation2 + $0x10] sm:$0xff]  ;;  %v1421_v25 = vand.u32 4294901760, %v1416_v22  ;;  %v939_v26 = vand.u32 4294901760, %v938_v20 }
 0x139   : > { %2435 = vmatprep.subr.bf16.mxu1 %v2895_v21  ;;  %v1418_v28 = vand.u32 4294901760, %v1415_v24  ;;  %v932_v30 = vand.u32 4294901760, %v931_v23  ;;  %v2442_v49 = vpack.c.bf16 %v938_v20, %v931_v23 }
 0x13a   : > { %2437 = vmatpush3.bf16.msra.mxu1 %v2895_v21  ;;  %v940_v32 = vsub.f32 %v938_v20, %v939_v26  ;;  %v1533_v33 = vsub.f32 %v1416_v22, %v1421_v25 }
 0x13b   : > { %v2901_v34 = vpack.c.bf16 %v1421_v25, %v1418_v28  ;;  %v933_v35 = vsub.f32 %v931_v23, %v932_v30  ;;  %v1526_v36 = vsub.f32 %v1415_v24, %v1418_v28  ;;  %v2450_v53 = vpack.c.bf16 %v939_v26, %v932_v30 }
 0x13c   : > { %v941_v37 = vand.u32 4294901760, %v940_v32  ;;  %v1534_v38 = vand.u32 4294901760, %v1533_v33 }
 0x13d   : > { %2295 = vmatmul.mubr.f32.vlgmr.msra.gmra.mrb[4].mxu1 %v903_v27  ;;  %2459 = vmatprep.subr.bf16.mxu0 %v2901_v34  ;;  %v934_v40 = vand.u32 4294901760, %v933_v35  ;;  %v1527_v41 = vand.u32 4294901760, %v1526_v36  ;;  %v2466_v52 = vpack.c.bf16 %v1533_v33, %v1526_v36 }
 0x13e   : > { %2461 = vmatpush3.bf16.msra.mxu0 %v2901_v34  ;;  %2297 = vmatprep.mubr.f32.mxu1 %v913_v31  ;;  %v1535_v42 = vsub.f32 %v1533_v33, %v1534_v38 }
 0x13f   : > { %v2438_v43 = vpack.c.bf16 %v941_v37, %v934_v40  ;;  %v1528_v44 = vsub.f32 %v1526_v36, %v1527_v41  ;;  %v2474_v54 = vpack.c.bf16 %v1534_v38, %v1527_v41 }
 0x140   : > { %v1536_v45 = vand.u32 4294901760, %v1535_v42 }
 0x141   : > { %2298 = vmatmul.mubr.f32.gmra.mrb[6].mxu1 %v923_v39  ;;  %2439 = vmatprep.subr.bf16.mxu1 %v2438_v43  ;;  %v1529_v50 = vand.u32 4294901760, %v1528_v44 }
 0x142   : > { %2355 = vmatmul.mubr.f32.vlgmr.msra.gmra.mrb[4].mxu0 %v903_v27  ;;  %2441 = vmatpush3.bf16.msra.mxu1 %v2438_v43 }
 0x143   : > { %2443 = vmatprep.subr.bf16.mxu1 %v2442_v49  ;;  %2304 = vmatprep.mubr.f32.mxu1 %v2841_v46  ;;  %v2462_v51 = vpack.c.bf16 %v1536_v45, %v1529_v50 }
 0x144   : > { %2357 = vmatprep.mubr.f32.mxu0 %v913_v31 }
 0x145   : > { %2305 = vmatmul.mubr.f32.vlgmr.msra.gmra.mrb[4].mxu1 %v2862_v60  ;;  %2463 = vmatprep.subr.bf16.mxu0 %v2462_v51 }
 0x146   : > { %2358 = vmatmul.mubr.f32.gmra.mrb[6].mxu0 %v923_v39  ;;  %2445 = vmatpush3.bf16.msra.mxu1 %v2442_v49 }
 0x147   : > { %2465 = vmatpush3.bf16.msra.mxu0 %v2462_v51  ;;  %2447 = vmatprep.subr.bf16.mxu1 %v2895_v21 }
 0x148   : > { %2467 = vmatprep.subr.bf16.mxu0 %v2466_v52  ;;  %2307 = vmatprep.mubr.f32.mxu1 %v2864_v0 }
 0x149   : > { %2364 = vmatprep.mubr.f32.mxu0 %v2841_v46  ;;  %2308 = vmatmul.mubr.f32.gmra.mrb[6].mxu1 %v2872_v5 }
 0x14a   : > { %2365 = vmatmul.mubr.f32.vlgmr.msra.gmra.mrb[4].mxu0 %v2862_v60  ;;  %2314 = vmatprep.mubr.f32.mxu1 %v2844_v47 }
 0x14b   : > { %2469 = vmatpush3.bf16.msra.mxu0 %v2466_v52  ;;  %2367 = vmatprep.mubr.f32.mxu0 %v2864_v0 }
 0x14c   : > { %2471 = vmatprep.subr.bf16.mxu0 %v2901_v34 }
 0x14d   : > { %2315 = vmatmul.mubr.f32.vlgmr.msra.gmra.mrb[4].mxu1 %v2870_v4 }
 0x14e   : > { %2449 = vmatpush3.bf16.msra.mxu1 %v2895_v21  ;;  %2368 = vmatmul.mubr.f32.gmra.mrb[6].mxu0 %v2872_v5 }
 0x14f   : > { %2451 = vmatprep.subr.bf16.mxu1 %v2450_v53  ;;  %2317 = vmatprep.mubr.f32.mxu1 %v2875_v8 }
 0x150   : > { %2374 = vmatprep.mubr.f32.mxu0 %v2844_v47 }
 0x151   : > { %2318 = vmatmul.mubr.f32.gmra.mrb[6].mxu1 %v2883_v11 }
 0x152   : > { %2375 = vmatmul.mubr.f32.vlgmr.msra.gmra.mrb[4].mxu0 %v2870_v4  ;;  %2324 = vmatprep.mubr.f32.mxu1 %v2847_v48 }
 0x153   : > { %2473 = vmatpush3.bf16.msra.mxu0 %v2901_v34  ;;  %2377 = vmatprep.mubr.f32.mxu0 %v2875_v8 }
 0x154   : > { %2475 = vmatprep.subr.bf16.mxu0 %v2474_v54 }
 0x155   : > { %2325 = vmatmul.mubr.f32.vlgmr.msra.gmra.mrb[4].mxu1 %v2880_v10 }
 0x156   : > { %2453 = vmatpush3.bf16.msra.mxu1 %v2450_v53  ;;  %2378 = vmatmul.mubr.f32.gmra.mrb[6].mxu0 %v2883_v11 }
 0x157   : > { %2455 = vmatprep.subr.bf16.mxu1 %v2895_v21  ;;  %2327 = vmatprep.mubr.f32.mxu1 %v2886_v12 }
 0x158   : > { %2384 = vmatprep.mubr.f32.mxu0 %v2847_v48 }
 0x159   : > { %2328 = vmatmul.mubr.f32.gmra.mrb[6].mxu1 %v2891_v18 }
 0x15a   : > { %2385 = vmatmul.mubr.f32.vlgmr.msra.gmra.mrb[4].mxu0 %v2880_v10  ;;  %2334 = vmatprep.mubr.f32.mxu1 %v2841_v46 }
 0x15b   : > { %2477 = vmatpush3.bf16.msra.mxu0 %v2474_v54  ;;  %2387 = vmatprep.mubr.f32.mxu0 %v2886_v12 }
 0x15c   : > { %2479 = vmatprep.subr.bf16.mxu0 %v2901_v34 }
 0x15d   : > { %2335 = vmatmul.mubr.f32.vlgmr.msra.gmra.mrb[4].mxu1 %v2862_v60 }
 0x15e   : > { %2457 = vmatpush3.bf16.msra.mxu1 %v2895_v21  ;;  %2388 = vmatmul.mubr.f32.gmra.mrb[6].mxu0 %v2891_v18 }
 0x15f   : > { %2337 = vmatprep.mubr.f32.mxu1 %v2864_v0  ;;  %2394 = vmatprep.mubr.f32.mxu0 %v2841_v46 }
 0x161   : > { %2338 = vmatmul.mubr.f32.gmra.mrb[6].mxu1 %v2872_v5 }
 0x162   : > { %2395 = vmatmul.mubr.f32.vlgmr.msra.gmra.mrb[4].mxu0 %v2862_v60  ;;  %2344 = vmatprep.mubr.f32.mxu1 %v2841_v46 }
 0x163   : > { %2481 = vmatpush3.bf16.msra.mxu0 %v2901_v34  ;;  %2397 = vmatprep.mubr.f32.mxu0 %v2864_v0 }
 0x165   : > { %2345 = vmatmul.mubr.f32.vlgmr.msra.gmra.mrb[4].mxu1 %v2862_v60 }
 0x166   : > { %2398 = vmatmul.mubr.f32.gmra.mrb[6].mxu0 %v2872_v5  ;;  %2347 = vmatprep.mubr.f32.mxu1 %v2864_v0 }
 0x167   : > { %2404 = vmatprep.mubr.f32.mxu0 %v2841_v46 }
 0x169   : > { %2348 = vmatmul.mubr.f32.gmra.mrb[6].mxu1 %v2872_v5 }
 0x16a   : > { %2405 = vmatmul.mubr.f32.vlgmr.msra.gmra.mrb[4].mxu0 %v2862_v60 }
 0x16b   : > { %2407 = vmatprep.mubr.f32.mxu0 %v2864_v0 }
 0x16e   : > { %2408 = vmatmul.mubr.f32.gmra.mrb[6].mxu0 %v2872_v5 }
 0x238   : > { %v2346_v47 = vpop.f32.mrb[4].mxu1 }
 0x239   : > { %1411 = vst.msk [vmem:[%s189_s30 + $0x8] sm:$0xff] %vm803_vm1, %v2346_v47  ;;  %v1388_v48 = vpop.f32.mrb[5].mxu1 }
 0x23a   : > { %1410 = vst.msk [vmem:[%s189_s30] sm:$0xff] %vm803_vm1, %v1388_v48 }
 0x23c   : > { %v2349_v46 = vpop.f32.mrb[6].mxu1 }
 0x23d   : > { %1413 = vst.msk [vmem:[%s189_s30 + $0x18] sm:$0xff] %vm803_vm1, %v2349_v46  ;;  %v2406_v55 = vpop.f32.mrb[4].mxu0  ;;  %v1400_v56 = vpop.f32.mrb[7].mxu1 }
 0x23e   : > { %2109 = vst.msk [vmem:[%s189_s30 + $0x28] sm:$0xff] %vm803_vm1, %v2406_v55  ;;  %1412 = vst.msk [vmem:[%s189_s30 + $0x10] sm:$0xff] %vm803_vm1, %v1400_v56  ;;  %v1983_v57 = vpop.f32.mrb[5].mxu0 }
 0x23f   : > { %2108 = vst.msk [vmem:[%s189_s30 + $0x20] sm:$0xff] %vm803_vm1, %v1983_v57 }
 0x241   : > { %v2409_v58 = vpop.f32.mrb[6].mxu0 }
 0x242   : > { %2111 = vst.msk [vmem:[%s189_s30 + $0x38] sm:$0xff] %vm803_vm1, %v2409_v58  ;;  %v1995_v59 = vpop.f32.mrb[7].mxu0 }
 0x243   : > { %2110 = vst.msk [vmem:[%s189_s30 + $0x30] sm:$0xff] %vm803_vm1, %v1995_v59 }
 0x244   : > { %2635 = shalt.err (!%p2632_p1)
}
 0x245   : > { %s2636_s19 = scalar_lea.hbm %s2966_s6, 1024  ;;  %s2640_s26 = scalar_lea.hbm %s3014_s3, 4096 }
 0x246   : > { %p2637_p3 = scmp.ne.s32.totalorder %s2966_s6, %s2636_s19  ;;  %p2641_p0 = scmp.lt.u32.totalorder %s2966_s6, %s3014_s3 }
 0x247   : > { %p2642_p2 = scmp.lt.u32.totalorder %s2640_s26, %s2636_s19  ;;  %p2644_p6 = scmp.lt.u32.totalorder %s2636_s19, %s2966_s6 }
 0x248   : > { %p2638_p4 = pnand %p2637_p3, %p3021_p10 }
 0x249   : > { %p2643_p7 = por %p2642_p2, %p2641_p0 }
 0x24a   : > { %p2639_p5 = pneg %p2638_p4 }
 0x24b   : > { %p2645_p11 = por %p2644_p6, %p2643_p7 }
 0x24d   : > { %p2646_p12 = pnand %p2645_p11, %p2639_p5 }
 0x24f   : > { %2649 = shalt.err (!%p2646_p12)
}
 0x250   : > { %s2694_s29 = smov 128   ;;  %s2695_s30 = smov 8  }
 0x251   : > { %2544 = dma.vmem_to_hbm [thread:$0]  (%p3021_p10), %s2960_s9, 1024, %s2966_s6, %s2011_s16, %s2694_s29, %s2694_s29, %s2695_s30  }
 0x252 PF: > { %p2555_p8 = scmp.ge.s32.totalorder %s2688_s15, 2  ;;  %s2040_s10 = sand.u32 1, %s2676_s12  }
 0x253   : > { %p3022_p9 = scmp.ne.s32.totalorder %s3019_s25, 0  ;;  %s2041_s11 = scalar_lea.sflag [#allocation5], %s2040_s10 }
 0x255   : > { %p2551_p13 = pnand %p2555_p8, %p3022_p9 }
 0x257   : > { %2671 = dma.done.wait (!%p2551_p13), %s2041_s11, 1024  }
 0x258   : > { %2673 = vsyncadd (!%p2551_p13), %s2041_s11, 4294966272  ;;  %p16_p1 = scmp.ge.s32.totalorder %s2741_s18, 6   ;;  %s3023_s12 = smov %s2680_s13 }
 0x259   : > { %s3024_s13 = smov %s2684_s14  ;;  %s3025_s14 = smov %s2753_s21 }
 0x25a   : > { %s3026_s15 = smov %s2741_s18  ;;  %18 = sbr.rel (!%p16_p1) target bundleno = 5 (0x5), region = 79 }
 0x261   :  { %2046 = vsyncpa [#allocation4], 1 }
 0x262   :  { %2048 = vsyncpa [#allocation4 + $0x1], 1 }
 0x263   :  { %2049 = vsyncpa [#allocation5], 1 }
 0x264   :  { %2051 = vsyncpa [#allocation5 + $0x1], 1 }

</bundles_post_ra>
